<compile_context>
chip_gen: v7x
topology: tpu7x:2x2x1
jax: 0.10.0
libtpu: 0.0.40
codegen_flags: <defaults>
</compile_context>

<pallas_src>
import jax
import jax.numpy as jnp
from jax.experimental import pallas as pl
from jax.experimental.pallas import tpu as pltpu

N_ACTIONS = 27
STATE_DIM = 2
HIDDEN = (128, 256, 256, 128)
OUT_PAD = 128          # lane-dense padded width of the last layer


def _round_up(n, m):
    return ((n + m - 1) // m) * m


def dqn_kernel(x_ref,
               w1_ref, b1_ref,
               w2_ref, b2_ref,
               w3_ref, b3_ref,
               w4_ref, b4_ref,
               w5_ref, b5_ref,
               o_ref):
    """One batch tile: 4 MXU matmuls + VPU head layer + ReLUs, all in VMEM."""
    x = x_ref[...].astype(jnp.float32)                 # (TM, 2)

    # Layer 1: K = 2 -> do it on the VPU (broadcast mul-add), skip the MXU.
    w1 = w1_ref[...].astype(jnp.float32)               # (2, 128)
    h = x[:, 0:1] * w1[0:1, :] + x[:, 1:2] * w1[1:2, :] + b1_ref[...]
    h = jnp.maximum(h, 0.0).astype(jnp.bfloat16)       # (TM, 128)

    # Layers 2-4: bf16 MXU matmuls, f32 accumulation, f32 bias add.
    h = jnp.dot(h, w2_ref[...], preferred_element_type=jnp.float32) + b2_ref[...]
    h = jnp.maximum(h, 0.0).astype(jnp.bfloat16)       # (TM, 256)

    h = jnp.dot(h, w3_ref[...], preferred_element_type=jnp.float32) + b3_ref[...]
    h = jnp.maximum(h, 0.0).astype(jnp.bfloat16)       # (TM, 256)

    h = jnp.dot(h, w4_ref[...], preferred_element_type=jnp.float32) + b4_ref[...]
    h = jnp.maximum(h, 0.0).astype(jnp.bfloat16)       # (TM, 128)

    # Layer 5: padded to 128 output lanes -> full unmasked stores.
    out = jnp.dot(h, w5_ref[...], preferred_element_type=jnp.float32) + b5_ref[...]
    o_ref[...] = out.astype(o_ref.dtype)               # (TM, 128)


def dqn_forward(x, params, tm=256):
    """x: (B, STATE_DIM) float32. params: [w1,b1,...,w5,b5] (bf16 W, f32 b).

    Returns (B, N_ACTIONS) float32.
    """
    B = x.shape[0]
    # Tile the batch; for small B just round up to the sublane granule (8).
    TM = min(tm, _round_up(B, 8))
    Bp = _round_up(B, TM)
    if Bp != B:
        x = jnp.pad(x, ((0, Bp - B), (0, 0)))

    grid = (pl.cdiv(Bp, TM),)

    # x / out tiles move per grid step; weights & biases are full blocks with a
    # constant index_map so they are fetched once and stay resident in VMEM.
    in_specs = [pl.BlockSpec((TM, STATE_DIM), lambda i: (i, 0))]
    for p in params:
        in_specs.append(pl.BlockSpec(p.shape, lambda i: (0, 0)))
    out_spec = pl.BlockSpec((TM, OUT_PAD), lambda i: (i, 0))

    out = pl.pallas_call(
        dqn_kernel,
        out_shape=jax.ShapeDtypeStruct((Bp, OUT_PAD), jnp.float32),
        grid=grid,
        in_specs=in_specs,
        out_specs=out_spec,
        compiler_params=pltpu.CompilerParams(
            dimension_semantics=("parallel",)),
    )(x, *params)

    return out[:B, :N_ACTIONS]


def init_params(key):
    """PyTorch-style U(-1/sqrt(fan_in), +) init.

    Weights stored (in, out) and cast to bf16 once here; biases kept (1, out)
    in f32. The last layer is zero-padded from 27 to 128 output columns.
    """
    dims = (STATE_DIM,) + HIDDEN + (N_ACTIONS,)
    params = []
    for i in range(len(dims) - 1):
        fan_in, fan_out = dims[i], dims[i + 1]
        key, kw, kb = jax.random.split(key, 3)
        bound = 1.0 / jnp.sqrt(fan_in)
        w = jax.random.uniform(kw, (fan_in, fan_out), jnp.float32, -bound, bound)
        b = jax.random.uniform(kb, (1, fan_out), jnp.float32, -bound, bound)
        if i == len(dims) - 2:  # pad final layer to a lane-dense 128 columns
            w = jnp.pad(w, ((0, 0), (0, OUT_PAD - fan_out)))
            b = jnp.pad(b, ((0, 0), (0, OUT_PAD - fan_out)))
        params += [w.astype(jnp.bfloat16), b]  # bf16 W, f32 b
    return params


def reference_forward(x, params):
    """Plain-JAX reference with the same dtype flow as the kernel."""
    w1, b1, w2, b2, w3, b3, w4, b4, w5, b5 = params
    x = x.astype(jnp.float32)
    w1f = w1.astype(jnp.float32)
    h = x[:, 0:1] * w1f[0:1, :] + x[:, 1:2] * w1f[1:2, :] + b1
    h = jnp.maximum(h, 0.0).astype(jnp.bfloat16)
    for w, b in ((w2, b2), (w3, b3), (w4, b4)):
        h = jnp.dot(h, w, preferred_element_type=jnp.float32) + b
        h = jnp.maximum(h, 0.0).astype(jnp.bfloat16)
    out = jnp.dot(h, w5, preferred_element_type=jnp.float32) + b5
    return out[:, :N_ACTIONS]


if __name__ == "__main__":
    key = jax.random.PRNGKey(0)
    key, kx = jax.random.split(key)

    batch = 8
    x = jax.random.normal(kx, (batch, STATE_DIM), dtype=jnp.float32)
    params = init_params(key)

    out = dqn_forward(x, params)
    out = jax.block_until_ready(out)

    ref = reference_forward(x, params)
    assert out.shape == (batch, N_ACTIONS), out.shape
    assert jnp.allclose(out, ref, atol=1e-2, rtol=1e-2), "mismatch vs reference"

    print("KERNEL_OK")
</pallas_src>

<mosaic_0001>
module attributes {stable_mosaic.version = 11 : i64} {
  func.func @dqn_kernel(%arg0: i32, %arg1: memref<8x2xf32, #tpu.memory_space<vmem>>, %arg2: memref<2x128xbf16, #tpu.memory_space<vmem>>, %arg3: memref<1x128xf32, #tpu.memory_space<vmem>>, %arg4: memref<128x256xbf16, #tpu.memory_space<vmem>>, %arg5: memref<1x256xf32, #tpu.memory_space<vmem>>, %arg6: memref<256x256xbf16, #tpu.memory_space<vmem>>, %arg7: memref<1x256xf32, #tpu.memory_space<vmem>>, %arg8: memref<256x128xbf16, #tpu.memory_space<vmem>>, %arg9: memref<1x128xf32, #tpu.memory_space<vmem>>, %arg10: memref<128x128xbf16, #tpu.memory_space<vmem>>, %arg11: memref<1x128xf32, #tpu.memory_space<vmem>>, %arg12: memref<8x128xf32, #tpu.memory_space<vmem>>) attributes {dimension_semantics = [#tpu.dimension_semantics<parallel>], iteration_bounds = array<i64: 1>, scalar_prefetch = 0 : i64, scratch_operands = 0 : i64, tpu.core_type = #tpu.core_type<tc>, window_params = [{transform_indices = @transform_0, window_bounds = array<i64: 8, 2>}, {pipeline_mode = #tpu.pipeline_mode<synchronous>, transform_indices = @transform_1, window_bounds = array<i64: 2, 128>}, {pipeline_mode = #tpu.pipeline_mode<synchronous>, transform_indices = @transform_2, window_bounds = array<i64: 1, 128>}, {pipeline_mode = #tpu.pipeline_mode<synchronous>, transform_indices = @transform_3, window_bounds = array<i64: 128, 256>}, {pipeline_mode = #tpu.pipeline_mode<synchronous>, transform_indices = @transform_4, window_bounds = array<i64: 1, 256>}, {pipeline_mode = #tpu.pipeline_mode<synchronous>, transform_indices = @transform_5, window_bounds = array<i64: 256, 256>}, {pipeline_mode = #tpu.pipeline_mode<synchronous>, transform_indices = @transform_6, window_bounds = array<i64: 1, 256>}, {pipeline_mode = #tpu.pipeline_mode<synchronous>, transform_indices = @transform_7, window_bounds = array<i64: 256, 128>}, {pipeline_mode = #tpu.pipeline_mode<synchronous>, transform_indices = @transform_8, window_bounds = array<i64: 1, 128>}, {pipeline_mode = #tpu.pipeline_mode<synchronous>, transform_indices = @transform_9, window_bounds = array<i64: 128, 128>}, {pipeline_mode = #tpu.pipeline_mode<synchronous>, transform_indices = @transform_10, window_bounds = array<i64: 1, 128>}, {transform_indices = @transform_11, window_bounds = array<i64: 8, 128>}]} {
    %c0 = arith.constant 0 : index
    %c0_0 = arith.constant 0 : index
    %0 = vector.load %arg1[%c0, %c0_0] : memref<8x2xf32, #tpu.memory_space<vmem>>, vector<8x2xf32>
    %c0_1 = arith.constant 0 : index
    %c0_2 = arith.constant 0 : index
    %1 = vector.load %arg2[%c0_1, %c0_2] : memref<2x128xbf16, #tpu.memory_space<vmem>>, vector<2x128xbf16>
    %2 = arith.extf %1 : vector<2x128xbf16> to vector<2x128xf32>
    %3 = vector.extract_strided_slice %0 {offsets = [0, 0], sizes = [8, 1], strides = [1, 1]} : vector<8x2xf32> to vector<8x1xf32>
    %4 = vector.extract_strided_slice %2 {offsets = [0, 0], sizes = [1, 128], strides = [1, 1]} : vector<2x128xf32> to vector<1x128xf32>
    %5 = vector.broadcast %3 : vector<8x1xf32> to vector<8x128xf32>
    %6 = vector.broadcast %4 : vector<1x128xf32> to vector<8x128xf32>
    %7 = arith.mulf %5, %6 : vector<8x128xf32>
    %8 = vector.extract_strided_slice %0 {offsets = [0, 1], sizes = [8, 1], strides = [1, 1]} : vector<8x2xf32> to vector<8x1xf32>
    %9 = vector.extract_strided_slice %2 {offsets = [1, 0], sizes = [1, 128], strides = [1, 1]} : vector<2x128xf32> to vector<1x128xf32>
    %10 = vector.broadcast %8 : vector<8x1xf32> to vector<8x128xf32>
    %11 = vector.broadcast %9 : vector<1x128xf32> to vector<8x128xf32>
    %12 = arith.mulf %10, %11 : vector<8x128xf32>
    %13 = arith.addf %7, %12 : vector<8x128xf32>
    %c0_3 = arith.constant 0 : index
    %c0_4 = arith.constant 0 : index
    %14 = vector.load %arg3[%c0_3, %c0_4] : memref<1x128xf32, #tpu.memory_space<vmem>>, vector<1x128xf32>
    %15 = vector.broadcast %14 : vector<1x128xf32> to vector<8x128xf32>
    %16 = arith.addf %13, %15 : vector<8x128xf32>
    %cst = arith.constant 0.000000e+00 : f32
    %17 = vector.broadcast %cst : f32 to vector<8x128xf32>
    %18 = arith.maximumf %16, %17 : vector<8x128xf32>
    %19 = arith.truncf %18 : vector<8x128xf32> to vector<8x128xbf16>
    %c0_5 = arith.constant 0 : index
    %c0_6 = arith.constant 0 : index
    %20 = vector.load %arg4[%c0_5, %c0_6] : memref<128x256xbf16, #tpu.memory_space<vmem>>, vector<128x256xbf16>
    %cst_7 = arith.constant dense<0.000000e+00> : vector<8x256xf32>
    %21 = tpu.matmul %19, %20, %cst_7 {dimension_numbers = #tpu.dot_dimension_numbers<[1], [0], [0], [1], [0, 0, 1, 1], [], []>} : vector<8x128xbf16>, vector<128x256xbf16>, vector<8x256xf32> -> vector<8x256xf32>
    %c0_8 = arith.constant 0 : index
    %c0_9 = arith.constant 0 : index
    %22 = vector.load %arg5[%c0_8, %c0_9] : memref<1x256xf32, #tpu.memory_space<vmem>>, vector<1x256xf32>
    %23 = vector.broadcast %22 : vector<1x256xf32> to vector<8x256xf32>
    %24 = arith.addf %21, %23 : vector<8x256xf32>
    %cst_10 = arith.constant 0.000000e+00 : f32
    %25 = vector.broadcast %cst_10 : f32 to vector<8x256xf32>
    %26 = arith.maximumf %24, %25 : vector<8x256xf32>
    %27 = arith.truncf %26 : vector<8x256xf32> to vector<8x256xbf16>
    %c0_11 = arith.constant 0 : index
    %c0_12 = arith.constant 0 : index
    %28 = vector.load %arg6[%c0_11, %c0_12] : memref<256x256xbf16, #tpu.memory_space<vmem>>, vector<256x256xbf16>
    %cst_13 = arith.constant dense<0.000000e+00> : vector<8x256xf32>
    %29 = tpu.matmul %27, %28, %cst_13 {dimension_numbers = #tpu.dot_dimension_numbers<[1], [0], [0], [1], [0, 0, 1, 1], [], []>} : vector<8x256xbf16>, vector<256x256xbf16>, vector<8x256xf32> -> vector<8x256xf32>
    %c0_14 = arith.constant 0 : index
    %c0_15 = arith.constant 0 : index
    %30 = vector.load %arg7[%c0_14, %c0_15] : memref<1x256xf32, #tpu.memory_space<vmem>>, vector<1x256xf32>
    %31 = vector.broadcast %30 : vector<1x256xf32> to vector<8x256xf32>
    %32 = arith.addf %29, %31 : vector<8x256xf32>
    %cst_16 = arith.constant 0.000000e+00 : f32
    %33 = vector.broadcast %cst_16 : f32 to vector<8x256xf32>
    %34 = arith.maximumf %32, %33 : vector<8x256xf32>
    %35 = arith.truncf %34 : vector<8x256xf32> to vector<8x256xbf16>
    %c0_17 = arith.constant 0 : index
    %c0_18 = arith.constant 0 : index
    %36 = vector.load %arg8[%c0_17, %c0_18] : memref<256x128xbf16, #tpu.memory_space<vmem>>, vector<256x128xbf16>
    %cst_19 = arith.constant dense<0.000000e+00> : vector<8x128xf32>
    %37 = tpu.matmul %35, %36, %cst_19 {dimension_numbers = #tpu.dot_dimension_numbers<[1], [0], [0], [1], [0, 0, 1, 1], [], []>} : vector<8x256xbf16>, vector<256x128xbf16>, vector<8x128xf32> -> vector<8x128xf32>
    %c0_20 = arith.constant 0 : index
    %c0_21 = arith.constant 0 : index
    %38 = vector.load %arg9[%c0_20, %c0_21] : memref<1x128xf32, #tpu.memory_space<vmem>>, vector<1x128xf32>
    %39 = vector.broadcast %38 : vector<1x128xf32> to vector<8x128xf32>
    %40 = arith.addf %37, %39 : vector<8x128xf32>
    %cst_22 = arith.constant 0.000000e+00 : f32
    %41 = vector.broadcast %cst_22 : f32 to vector<8x128xf32>
    %42 = arith.maximumf %40, %41 : vector<8x128xf32>
    %43 = arith.truncf %42 : vector<8x128xf32> to vector<8x128xbf16>
    %c0_23 = arith.constant 0 : index
    %c0_24 = arith.constant 0 : index
    %44 = vector.load %arg10[%c0_23, %c0_24] : memref<128x128xbf16, #tpu.memory_space<vmem>>, vector<128x128xbf16>
    %cst_25 = arith.constant dense<0.000000e+00> : vector<8x128xf32>
    %45 = tpu.matmul %43, %44, %cst_25 {dimension_numbers = #tpu.dot_dimension_numbers<[1], [0], [0], [1], [0, 0, 1, 1], [], []>} : vector<8x128xbf16>, vector<128x128xbf16>, vector<8x128xf32> -> vector<8x128xf32>
    %c0_26 = arith.constant 0 : index
    %c0_27 = arith.constant 0 : index
    %46 = vector.load %arg11[%c0_26, %c0_27] : memref<1x128xf32, #tpu.memory_space<vmem>>, vector<1x128xf32>
    %47 = vector.broadcast %46 : vector<1x128xf32> to vector<8x128xf32>
    %48 = arith.addf %45, %47 : vector<8x128xf32>
    %c0_28 = arith.constant 0 : index
    %c0_29 = arith.constant 0 : index
    %49 = vector.load %arg12[%c0_28, %c0_29] : memref<8x128xf32, #tpu.memory_space<vmem>>, vector<8x128xf32>
    tpu.vector_store %arg12[%c0_28, %c0_29], %48 {strides = array<i32>} : memref<8x128xf32, #tpu.memory_space<vmem>>, vector<8x128xf32>,
    return
  }
  func.func @transform_0(%arg0: i32) -> (i32, i32) {
    %c0_i32 = arith.constant 0 : i32
    %c0_i32_0 = arith.constant 0 : i32
    return %arg0, %c0_i32 : i32, i32
  }
  func.func @transform_1(%arg0: i32) -> (i32, i32) {
    %c0_i32 = arith.constant 0 : i32
    %c0_i32_0 = arith.constant 0 : i32
    %c0_i32_1 = arith.constant 0 : i32
    return %c0_i32, %c0_i32_0 : i32, i32
  }
  func.func @transform_2(%arg0: i32) -> (i32, i32) {
    %c0_i32 = arith.constant 0 : i32
    %c0_i32_0 = arith.constant 0 : i32
    %c0_i32_1 = arith.constant 0 : i32
    return %c0_i32, %c0_i32_0 : i32, i32
  }
  func.func @transform_3(%arg0: i32) -> (i32, i32) {
    %c0_i32 = arith.constant 0 : i32
    %c0_i32_0 = arith.constant 0 : i32
    %c0_i32_1 = arith.constant 0 : i32
    return %c0_i32, %c0_i32_0 : i32, i32
  }
  func.func @transform_4(%arg0: i32) -> (i32, i32) {
    %c0_i32 = arith.constant 0 : i32
    %c0_i32_0 = arith.constant 0 : i32
    %c0_i32_1 = arith.constant 0 : i32
    return %c0_i32, %c0_i32_0 : i32, i32
  }
  func.func @transform_5(%arg0: i32) -> (i32, i32) {
    %c0_i32 = arith.constant 0 : i32
    %c0_i32_0 = arith.constant 0 : i32
    %c0_i32_1 = arith.constant 0 : i32
    return %c0_i32, %c0_i32_0 : i32, i32
  }
  func.func @transform_6(%arg0: i32) -> (i32, i32) {
    %c0_i32 = arith.constant 0 : i32
    %c0_i32_0 = arith.constant 0 : i32
    %c0_i32_1 = arith.constant 0 : i32
    return %c0_i32, %c0_i32_0 : i32, i32
  }
  func.func @transform_7(%arg0: i32) -> (i32, i32) {
    %c0_i32 = arith.constant 0 : i32
    %c0_i32_0 = arith.constant 0 : i32
    %c0_i32_1 = arith.constant 0 : i32
    return %c0_i32, %c0_i32_0 : i32, i32
  }
  func.func @transform_8(%arg0: i32) -> (i32, i32) {
    %c0_i32 = arith.constant 0 : i32
    %c0_i32_0 = arith.constant 0 : i32
    %c0_i32_1 = arith.constant 0 : i32
    return %c0_i32, %c0_i32_0 : i32, i32
  }
  func.func @transform_9(%arg0: i32) -> (i32, i32) {
    %c0_i32 = arith.constant 0 : i32
    %c0_i32_0 = arith.constant 0 : i32
    %c0_i32_1 = arith.constant 0 : i32
    return %c0_i32, %c0_i32_0 : i32, i32
  }
  func.func @transform_10(%arg0: i32) -> (i32, i32) {
    %c0_i32 = arith.constant 0 : i32
    %c0_i32_0 = arith.constant 0 : i32
    %c0_i32_1 = arith.constant 0 : i32
    return %c0_i32, %c0_i32_0 : i32, i32
  }
  func.func @transform_11(%arg0: i32) -> (i32, i32) {
    %c0_i32 = arith.constant 0 : i32
    %c0_i32_0 = arith.constant 0 : i32
    return %arg0, %c0_i32 : i32, i32
  }
}

</mosaic_0001>

<bundles_post_ra>
// kernel: tpu_custom_call.1
= control target key start
LH: loop header
LB: loop body
LE: loop exit
PB: predicated region body
PF: predicated region fallthrough
CT: control target
= control target key end

     0   :  { %16 = vsyncpa [#allocation3], 0  ;;  %s1362_s0 = inlined_call_operand.vmem [shape: f32[8,2], index: 0, kind: input, shape index: {}]   ;;  %s1363_s1 = inlined_call_operand.vmem [shape: bf16[2,128], index: 1, kind: input, shape index: {}]   ;;  %s1364_s2 = inlined_call_operand.vmem [shape: f32[1,128], index: 2, kind: input, shape index: {}]   ;;  %s1365_s3 = inlined_call_operand.hbm [shape: bf16[128,256], index: 3, kind: input, shape index: {}]   ;;  %s1366_s4 = inlined_call_operand.vmem [shape: f32[1,256], index: 4, kind: input, shape index: {}]   ;;  %s1367_s5 = inlined_call_operand.hbm [shape: bf16[256,256], index: 5, kind: input, shape index: {}]   ;;  %s1368_s6 = inlined_call_operand.vmem [shape: f32[1,256], index: 6, kind: input, shape index: {}]   ;;  %s1369_s7 = inlined_call_operand.hbm [shape: bf16[256,128], index: 7, kind: input, shape index: {}]   ;;  %s1370_s8 = inlined_call_operand.vmem [shape: f32[1,128], index: 8, kind: input, shape index: {}]   ;;  %s1371_s9 = inlined_call_operand.hbm [shape: bf16[128,128], index: 9, kind: input, shape index: {}]   ;;  %s1372_s10 = inlined_call_operand.vmem [shape: f32[1,128], index: 10, kind: input, shape index: {}]   ;;  %s1373_s11 = inlined_call_operand.hbm [shape: f32[8,128], index: 11, kind: output, shape index: {}]  }
   0x1   :  { %17 = vsyncpa [#allocation6], 0 }
   0x2   :  { %18 = vsyncpa [#allocation9], 0 }
   0x3   :  { %19 = vsyncpa [#allocation4], 0  ;;  %s1191_s17 = smov [#allocation5]   ;;  %s1192_s19 = smov [#allocation2]  }
   0x4   :  { %s45_s18 = sshll.u32 %s1191_s17, 4  ;;  %s31_s20 = sshll.u32 %s1192_s19, 4  ;;  %s46_s18 = int_to_ptr.vmem [resolvable:$true] %s45_s18  ;;  %s1264_s20 = int_to_ptr.vmem [resolvable:$true] %s31_s20 }
   0x5   :  { %s1073_s23 = scalar_lea.hbm %s1367_s5, 4096 }
   0x6   :  { %p1074_p0 = scmp.ne.s32.totalorder %s1367_s5, %s1073_s23  ;;  %p1077_p1 = scmp.lt.u32.totalorder %s1073_s23, %s1367_s5 }
   0x8   :  { %p1079_p2 = pnand %p1077_p1, %p1074_p0 }
   0xa   :  { %1082 = shalt.err (!%p1079_p2)
}
   0xb   :  { %s1083_s28 = scalar_lea.vmem %s46_s18, 4096  ;;  %p1088_p4 = scmp.lt.s32.totalorder %s46_s18, %s46_s18 }
   0xc   :  { %p1084_p3 = scmp.ne.s32.totalorder %s46_s18, %s1083_s28  ;;  %p1089_p5 = scmp.lt.s32.totalorder %s1083_s28, %s1083_s28 }
   0xe   :  { %p1090_p6 = por %p1089_p5, %p1088_p4 }
  0x10   :  { %p1091_p7 = pnand %p1090_p6, %p1084_p3 }
  0x12   :  { %1094 = shalt.err (!%p1091_p7)
}
  0x13   :  { %s1193_s29 = smov 128   ;;  %s1194_s30 = smov 8  }
  0x14   :  { %51 = dma.hbm_to_vmem [thread:$0]  %s1367_s5, 4096, %s46_s18, [#allocation6], %s1193_s29, %s1193_s29, %s1194_s30  }
  0x15   :  { %s1095_s16 = scalar_lea.hbm %s1365_s3, 2048 }
  0x16   :  { %p1096_p8 = scmp.ne.s32.totalorder %s1365_s3, %s1095_s16  ;;  %p1099_p9 = scmp.lt.u32.totalorder %s1095_s16, %s1365_s3 }
  0x18   :  { %p1101_p10 = pnand %p1099_p9, %p1096_p8 }
  0x1a   :  { %1104 = shalt.err (!%p1101_p10)
}
  0x1b   :  { %s1105_s23 = scalar_lea.vmem %s1264_s20, 2048  ;;  %p1110_p12 = scmp.lt.s32.totalorder %s1264_s20, %s1264_s20 }
  0x1c   :  { %p1106_p11 = scmp.ne.s32.totalorder %s1264_s20, %s1105_s23  ;;  %p1111_p13 = scmp.lt.s32.totalorder %s1105_s23, %s1105_s23 }
  0x1e   :  { %p1112_p0 = por %p1111_p13, %p1110_p12 }
  0x20   :  { %p1113_p1 = pnand %p1112_p0, %p1106_p11 }
  0x22   :  { %1116 = shalt.err (!%p1113_p1)
}
  0x23   :  { %37 = dma.hbm_to_vmem [thread:$0]  %s1365_s3, 2048, %s1264_s20, [#allocation3], %s1193_s29, %s1193_s29, %s1194_s30  }
  0x24   :  { %s1195_s24 = smov [#allocation7]   ;;  %s1117_s28 = scalar_lea.hbm %s1369_s7, 2048 }
  0x25   :  { %s59_s25 = sshll.u32 %s1195_s24, 4  ;;  %p1118_p2 = scmp.ne.s32.totalorder %s1369_s7, %s1117_s28  ;;  %s60_s25 = int_to_ptr.vmem [resolvable:$true] %s59_s25 }
  0x26   :  { %p1121_p3 = scmp.lt.u32.totalorder %s1117_s28, %s1369_s7 }
  0x28   :  { %p1123_p4 = pnand %p1121_p3, %p1118_p2 }
  0x2a   :  { %1126 = shalt.err (!%p1123_p4)
}
  0x2b   :  { %s1127_s16 = scalar_lea.vmem %s60_s25, 2048  ;;  %p1132_p6 = scmp.lt.s32.totalorder %s60_s25, %s60_s25 }
  0x2c   :  { %p1128_p5 = scmp.ne.s32.totalorder %s60_s25, %s1127_s16  ;;  %p1133_p7 = scmp.lt.s32.totalorder %s1127_s16, %s1127_s16 }
  0x2e   :  { %p1134_p8 = por %p1133_p7, %p1132_p6 }
  0x30   :  { %p1135_p9 = pnand %p1134_p8, %p1128_p5 }
  0x32   :  { %1138 = shalt.err (!%p1135_p9)
}
  0x33   :  { %s1196_s3 = smov 64   ;;  %s1197_s20 = smov 4  }
  0x34   :  { %65 = dma.hbm_to_vmem [thread:$0]  %s1369_s7, 2048, %s60_s25, [#allocation6], %s1196_s3, %s1196_s3, %s1197_s20  }
  0x35   :  { %s1198_s17 = smov [#allocation8]   ;;  %s1139_s23 = scalar_lea.hbm %s1371_s9, 1024 }
  0x36   :  { %s73_s19 = sshll.u32 %s1198_s17, 4  ;;  %p1140_p10 = scmp.ne.s32.totalorder %s1371_s9, %s1139_s23  ;;  %s74_s19 = int_to_ptr.vmem [resolvable:$true] %s73_s19 }
  0x37   :  { %p1143_p11 = scmp.lt.u32.totalorder %s1139_s23, %s1371_s9 }
  0x39   :  { %p1145_p12 = pnand %p1143_p11, %p1140_p10 }
  0x3b   :  { %1148 = shalt.err (!%p1145_p12)
}
  0x3c   :  { %s1149_s27 = scalar_lea.vmem %s74_s19, 1024  ;;  %p1154_p0 = scmp.lt.s32.totalorder %s74_s19, %s74_s19 }
  0x3d   :  { %p1150_p13 = scmp.ne.s32.totalorder %s74_s19, %s1149_s27  ;;  %p1155_p1 = scmp.lt.s32.totalorder %s1149_s27, %s1149_s27 }
  0x3f   :  { %p1156_p2 = por %p1155_p1, %p1154_p0 }
  0x41   :  { %p1157_p3 = pnand %p1156_p2, %p1150_p13 }
  0x43   :  { %1160 = shalt.err (!%p1157_p3)
}
  0x44   :  { %79 = dma.hbm_to_vmem [thread:$0]  %s1371_s9, 1024, %s74_s19, [#allocation9], %s1196_s3, %s1196_s3, %s1197_s20  }
  0x45   :  { %1183 = dma.done.wait [#allocation3], 2048  }
  0x46   :  { %1184 = vsyncadd [#allocation3], 4294965248 }
  0x47   :  { %1185 = dma.done.wait [#allocation6], 6144  }
  0x48   :  { %1186 = vsyncadd [#allocation6], 4294961152 }
  0x49   :  { %1187 = dma.done.wait [#allocation9], 1024  }
  0x4a   :  { %1188 = vsyncadd [#allocation9], 4294966272  ;;  %v1199_v0 = vmov 0   ;;  %v95_v1 = vld [vmem:[%s1362_s0] sm:$0xff]  ;;  %v980_v4 = vld [vmem:[#allocation2 + $0x14] ss:$8 sps:$4 sm:$0xff]   ;;  %v103_v47 = vlaneseq }
  0x4b   :  { %975 = vset.pattern.permute.xlu0 %v1199_v0  ;;  %268 = vmatprep.mubr.bf16.mxu0 %v1199_v0  ;;  %v977_v2 = vld [vmem:[#allocation2 + $0x4] ss:$8 sps:$4 sm:$0xff]   ;;  %v979_v3 = vld [vmem:[#allocation2] ss:$8 sps:$4 sm:$0xff]   ;;  %v982_v5 = vld [vmem:[#allocation2 + $0x10] ss:$8 sps:$4 sm:$0xff]  }
  0x4c   :  { %100 = vperm.xlu0 %975, %v95_v1   ;;  %236 = vmatprep.subr.bf16.mxu0 %v977_v2  ;;  %v1200_v6 = vmov 1   ;;  %v983_v7 = vld [vmem:[#allocation2 + $0x24] ss:$8 sps:$4 sm:$0xff]   ;;  %v985_v8 = vld [vmem:[#allocation2 + $0x20] ss:$8 sps:$4 sm:$0xff]   ;;  %v104_v48 = vshrl.u32 %v103_v47, 7 }
  0x4d   :  { %237 = vmatpush1.bf16.msra.mxu0 %v979_v3  ;;  %v986_v9 = vld [vmem:[#allocation2 + $0x34] ss:$8 sps:$4 sm:$0xff]   ;;  %v988_v10 = vld [vmem:[#allocation2 + $0x30] ss:$8 sps:$4 sm:$0xff]   ;;  %v989_v11 = vld [vmem:[#allocation2 + $0x44] ss:$8 sps:$4 sm:$0xff]  }
  0x4e   :  { %238 = vmatprep.subr.bf16.mxu0 %v980_v4  ;;  %v991_v12 = vld [vmem:[#allocation2 + $0x40] ss:$8 sps:$4 sm:$0xff]   ;;  %v1001_v13 = vld [vmem:[#allocation5 + $0x4] ss:$8 sps:$4 sm:$0xff]   ;;  %v1004_v15 = vld [vmem:[#allocation5 + $0x14] ss:$8 sps:$4 sm:$0xff]  }
  0x4f   :  { %v1003_v14 = vld [vmem:[#allocation5] ss:$8 sps:$4 sm:$0xff]   ;;  %v992_v16 = vld [vmem:[#allocation2 + $0x54] ss:$8 sps:$4 sm:$0xff]   ;;  %485 = vmatprep.subr.bf16.mxu1 %v1001_v13  ;;  %v1006_v17 = vld [vmem:[#allocation5 + $0x10] ss:$8 sps:$4 sm:$0xff]  }
  0x50   :  { %976 = vset.pattern.permute.xlu0 %v1200_v6  ;;  %486 = vmatpush1.bf16.msra.mxu1 %v1003_v14  ;;  %v994_v18 = vld [vmem:[#allocation2 + $0x50] ss:$8 sps:$4 sm:$0xff]   ;;  %v1007_v19 = vld [vmem:[#allocation5 + $0x24] ss:$8 sps:$4 sm:$0xff]   ;;  %v1009_v21 = vld [vmem:[#allocation5 + $0x20] ss:$8 sps:$4 sm:$0xff]  }
  0x51   :  { %109 = vperm.xlu0 %976, %v95_v1   ;;  %239 = vmatpush1.bf16.msra.mxu0 %v982_v5  ;;  %v995_v20 = vld [vmem:[#allocation2 + $0x64] ss:$8 sps:$4 sm:$0xff]   ;;  %v997_v22 = vld [vmem:[#allocation2 + $0x60] ss:$8 sps:$4 sm:$0xff]   ;;  %v1010_v23 = vld [vmem:[#allocation5 + $0x34] ss:$8 sps:$4 sm:$0xff]  }
  0x52   :  { %240 = vmatprep.subr.bf16.mxu0 %v983_v7  ;;  %487 = vmatprep.subr.bf16.mxu1 %v1004_v15  ;;  %v998_v24 = vld [vmem:[#allocation2 + $0x74] ss:$8 sps:$4 sm:$0xff]   ;;  %v1012_v25 = vld [vmem:[#allocation5 + $0x30] ss:$8 sps:$4 sm:$0xff]   ;;  %v1013_v27 = vld [vmem:[#allocation5 + $0x44] ss:$8 sps:$4 sm:$0xff]  }
  0x53   :  { %v1000_v26 = vld [vmem:[#allocation2 + $0x70] ss:$8 sps:$4 sm:$0xff]   ;;  %v1015_v28 = vld [vmem:[#allocation5 + $0x40] ss:$8 sps:$4 sm:$0xff]   ;;  %v1016_v29 = vld [vmem:[#allocation5 + $0x54] ss:$8 sps:$4 sm:$0xff]  }
  0x54   :  { %488 = vmatpush1.bf16.msra.mxu1 %v1006_v17  ;;  %v1018_v30 = vld [vmem:[#allocation5 + $0x50] ss:$8 sps:$4 sm:$0xff]   ;;  %v1019_v31 = vld [vmem:[#allocation5 + $0x64] ss:$8 sps:$4 sm:$0xff]   ;;  %v1021_v32 = vld [vmem:[#allocation5 + $0x60] ss:$8 sps:$4 sm:$0xff]  }
  0x55   :  { %241 = vmatpush1.bf16.msra.mxu0 %v985_v8  ;;  %489 = vmatprep.subr.bf16.mxu1 %v1007_v19  ;;  %v1022_v33 = vld [vmem:[#allocation5 + $0x74] ss:$8 sps:$4 sm:$0xff]   ;;  %v1024_v34 = vld [vmem:[#allocation5 + $0x70] ss:$8 sps:$4 sm:$0xff]   ;;  %v1025_v35 = vld [vmem:[#allocation5 + $0x84] ss:$8 sps:$4 sm:$0xff]  }
  0x56   :  { %242 = vmatprep.subr.bf16.mxu0 %v986_v9  ;;  %v1027_v36 = vld [vmem:[#allocation5 + $0x80] ss:$8 sps:$4 sm:$0xff]   ;;  %v1028_v37 = vld [vmem:[#allocation5 + $0x94] ss:$8 sps:$4 sm:$0xff]   ;;  %v1030_v38 = vld [vmem:[#allocation5 + $0x90] ss:$8 sps:$4 sm:$0xff]  }
  0x57   :  { %v1031_v39 = vld [vmem:[#allocation5 + $0xa4] ss:$8 sps:$4 sm:$0xff]   ;;  %v1033_v40 = vld [vmem:[#allocation5 + $0xa0] ss:$8 sps:$4 sm:$0xff]   ;;  %v1034_v41 = vld [vmem:[#allocation5 + $0xb4] ss:$8 sps:$4 sm:$0xff]  }
  0x58   :  { %490 = vmatpush1.bf16.msra.mxu1 %v1009_v21  ;;  %v1036_v42 = vld [vmem:[#allocation5 + $0xb0] ss:$8 sps:$4 sm:$0xff]   ;;  %v1037_v43 = vld [vmem:[#allocation5 + $0xc4] ss:$8 sps:$4 sm:$0xff]   ;;  %v1039_v44 = vld [vmem:[#allocation5 + $0xc0] ss:$8 sps:$4 sm:$0xff]  }
  0x59   :  { %243 = vmatpush1.bf16.msra.mxu0 %v988_v10  ;;  %491 = vmatprep.subr.bf16.mxu1 %v1010_v23  ;;  %v1040_v45 = vld [vmem:[#allocation5 + $0xd4] ss:$8 sps:$4 sm:$0xff]   ;;  %v1042_v46 = vld [vmem:[#allocation5 + $0xd0] ss:$8 sps:$4 sm:$0xff]   ;;  %v96_v49 = vld [vmem:[%s1363_s1] sm:$0x1] }
  0x5a   :  { %244 = vmatprep.subr.bf16.mxu0 %v989_v11  ;;  %v97_v50 = vunpack.c.l.bf16 %v96_v49  ;;  %v1325_v51 = vsub.s32 0, %v104_v48  ;;  %v1327_v52 = vsub.s32 1, %v104_v48  ;;  %v836_v59 = vld [vmem:[%s1364_s2] ss:$0 sm:$0xff]  ;;  %v1043_v0 = vld [vmem:[#allocation5 + $0xe4] ss:$8 sps:$4 sm:$0xff]  }
  0x5b   :  { %v1045_v1 = vld [vmem:[#allocation5 + $0xe0] ss:$8 sps:$4 sm:$0xff]   ;;  %v1046_v2 = vld [vmem:[#allocation5 + $0xf4] ss:$8 sps:$4 sm:$0xff]   ;;  %v1048_v3 = vld [vmem:[#allocation5 + $0xf0] ss:$8 sps:$4 sm:$0xff]  }
  0x5c   :  { %492 = vmatpush1.bf16.msra.mxu1 %v1012_v25  ;;  %v106_v54 = vrot.slane %v97_v50, %v1325_v51  ;;  %v115_v55 = vrot.slane %v97_v50, %v1327_v52  ;;  %v1049_v4 = vld [vmem:[#allocation7 + $0x40] sm:$0xff]   ;;  %v1051_v6 = vld [vmem:[#allocation7 + $0x48] sm:$0xff]   ;;  %v1053_v8 = vld [vmem:[#allocation7 + $0x50] sm:$0xff]   ;;  %vm1202_vm0 = vmmov 0   ;;  %s1203_s29 = smov [#allocation10]  }
  0x5d   :  { %245 = vmatpush1.bf16.msra.mxu0 %v991_v12  ;;  %493 = vmatprep.subr.bf16.mxu1 %v1013_v27  ;;  %v1050_v5 = vld [vmem:[#allocation7] sm:$0xff]   ;;  %v1052_v7 = vld [vmem:[#allocation7 + $0x8] sm:$0xff]   ;;  %v1054_v9 = vld [vmem:[#allocation7 + $0x10] sm:$0xff]   ;;  %s825_s30 = sshll.u32 %s1203_s29, 4  ;;  %s826_s30 = int_to_ptr.vmem [resolvable:$true] %s825_s30 }
  0x5e   :  { %246 = vmatprep.subr.bf16.mxu0 %v992_v16  ;;  %v1055_v10 = vld [vmem:[#allocation7 + $0x58] sm:$0xff]   ;;  %v1057_v12 = vld [vmem:[#allocation7 + $0x60] sm:$0xff]   ;;  %v1059_v14 = vld [vmem:[#allocation7 + $0x68] sm:$0xff]   ;;  %p1166_p5 = scmp.lt.s32.totalorder %s826_s30, %s826_s30 }
  0x5f   :  { %v1056_v11 = vld [vmem:[#allocation7 + $0x18] sm:$0xff]   ;;  %v1058_v13 = vld [vmem:[#allocation7 + $0x20] sm:$0xff]   ;;  %v1060_v15 = vld [vmem:[#allocation7 + $0x28] sm:$0xff]  }
  0x60   :  { %494 = vmatpush1.bf16.msra.mxu1 %v1015_v28  ;;  %v144_v16 = vld [vmem:[%s1366_s4] sm:$0x3]  ;;  %v1067_v49 = vld [vmem:[#allocation8 + $0x10] sm:$0xff]   ;;  %v1068_v50 = vld [vmem:[#allocation8 + $0x18] sm:$0xff]  }
  0x61   :  { %247 = vmatpush1.bf16.msra.mxu0 %v994_v18  ;;  %495 = vmatprep.subr.bf16.mxu1 %v1016_v29  ;;  %v149_v17 = vrot.slane %v144_v16, %v1325_v51  ;;  %v153_v18 = vrot.slane %v144_v16, %v1327_v52  ;;  %v1061_v29 = vld [vmem:[#allocation7 + $0x70] sm:$0xff]   ;;  %v1066_v48 = vld [vmem:[#allocation8 + $0x8] sm:$0xff]  }
  0x62   :  { %248 = vmatprep.subr.bf16.mxu0 %v995_v20 }
  0x64   :  { %496 = vmatpush1.bf16.msra.mxu1 %v1018_v30  ;;  %v1062_v30 = vld [vmem:[#allocation7 + $0x30] sm:$0xff]  }
  0x65   :  { %249 = vmatpush1.bf16.msra.mxu0 %v997_v22  ;;  %497 = vmatprep.subr.bf16.mxu1 %v1019_v31  ;;  %v1063_v31 = vld [vmem:[#allocation7 + $0x78] sm:$0xff]  }
  0x66   :  { %250 = vmatprep.subr.bf16.mxu0 %v998_v24 }
  0x68   :  { %498 = vmatpush1.bf16.msra.mxu1 %v1021_v32  ;;  %v1064_v32 = vld [vmem:[#allocation7 + $0x38] sm:$0xff]  }
  0x69   :  { %251 = vmatpush1.bf16.msra.mxu0 %v1000_v26  ;;  %499 = vmatprep.subr.bf16.mxu1 %v1022_v33  ;;  %v1201_v33 = vmov 0.0  }
  0x6a   :  { %911 = vmatprep.subr.bf16.mxu0 %v1049_v4 }
  0x6c   :  { %500 = vmatpush1.bf16.msra.mxu1 %v1024_v34  ;;  %v313_v34 = vld [vmem:[%s1368_s6] sm:$0x3] }
  0x6d   :  { %501 = vmatprep.subr.bf16.mxu1 %v1025_v35  ;;  %v318_v35 = vrot.slane %v313_v34, %v1325_v51  ;;  %v1069_v51 = vld [vmem:[#allocation8 + $0x20] sm:$0xff]  }
  0x70   :  { %502 = vmatpush1.bf16.msra.mxu1 %v1027_v36  ;;  %v322_v36 = vrot.slane %v313_v34, %v1327_v52  ;;  %v1070_v52 = vld [vmem:[#allocation8 + $0x28] sm:$0xff]  }
  0x71   :  { %503 = vmatprep.subr.bf16.mxu1 %v1028_v37 }
  0x74   :  { %504 = vmatpush1.bf16.msra.mxu1 %v1030_v38 }
  0x75   :  { %505 = vmatprep.subr.bf16.mxu1 %v1031_v39 }
  0x78   :  { %506 = vmatpush1.bf16.msra.mxu1 %v1033_v40 }
  0x79   :  { %507 = vmatprep.subr.bf16.mxu1 %v1034_v41 }
  0x7c   :  { %508 = vmatpush1.bf16.msra.mxu1 %v1036_v42 }
  0x7d   :  { %509 = vmatprep.subr.bf16.mxu1 %v1037_v43 }
  0x80   :  { %510 = vmatpush1.bf16.msra.mxu1 %v1039_v44 }
  0x81   :  { %511 = vmatprep.subr.bf16.mxu1 %v1040_v45 }
  0x84   :  { %512 = vmatpush1.bf16.msra.mxu1 %v1042_v46  ;;  %v1065_v46 = vld [vmem:[#allocation8] sm:$0xff]  }
  0x85   :  { %513 = vmatprep.subr.bf16.mxu1 %v1043_v0  ;;  %v902_v0 = vld [vmem:[%s1372_s10] ss:$0 sm:$0xff] }
  0x88   :  { %514 = vmatpush1.bf16.msra.mxu1 %v1045_v1 }
  0x89   :  { %515 = vmatprep.subr.bf16.mxu1 %v1046_v2 }
  0x8c   :  { %516 = vmatpush1.bf16.msra.mxu1 %v1048_v3 }
  0xcb   :  { %v101_v53 = vpop.permute.xlu0 %100 }
  0xcc   :  { %v107_v57 = vmul.f32 %v106_v54, %v101_v53  ;;  %v1071_v53 = vld [vmem:[#allocation8 + $0x30] sm:$0xff]   ;;  %v1072_v54 = vld [vmem:[#allocation8 + $0x38] sm:$0xff]  }
  0xd0   :  { %v110_v56 = vpop.permute.xlu0 %109 }
  0xd1   :  { %v116_v58 = vmul.f32 %v115_v55, %v110_v56  ;;  %v885_v56 = vld [vmem:[%s1370_s8] ss:$0 sm:$0xff]  ;;  %s1161_s8 = scalar_lea.vmem %s826_s30, 128 }
  0xd2   :  { %p1162_p4 = scmp.ne.s32.totalorder %s826_s30, %s1161_s8  ;;  %p1167_p6 = scmp.lt.s32.totalorder %s1161_s8, %s1161_s8 }
  0xd3   :  { %v117_v60 = vadd.f32 %v116_v58, %v107_v57 }
  0xd4   :  { %p1168_p7 = por %p1167_p6, %p1166_p5 }
  0xd5   :  { %v125_v61 = vadd.f32 %v836_v59, %v117_v60 }
  0xd6   :  { %p1169_p8 = pnand %p1168_p7, %p1162_p4 }
  0xd7   :  { %v126_v62 = vmax.f32 %v125_v61, 0.0 }
  0xd9   :  { %v127_v63 = vpack.c.bf16 %v126_v62, %v126_v62 }
  0xdb   :  { %269 = vmatmul.mubr.bf16.vlgmr.msra.gmra.mrb[0].mxu0 %v127_v63 }
  0xdc   :  { %912 = vmatpush3.bf16.msra.mxu0 %v1050_v5 }
  0xdd   :  { %913 = vmatprep.subr.bf16.mxu0 %v1051_v6 }
  0xe0   :  { %914 = vmatpush3.bf16.msra.mxu0 %v1052_v7 }
  0xe1   :  { %915 = vmatprep.subr.bf16.mxu0 %v1053_v8 }
  0xe4   :  { %916 = vmatpush3.bf16.msra.mxu0 %v1054_v9 }
  0xe5   :  { %917 = vmatprep.subr.bf16.mxu0 %v1055_v10 }
  0xe8   :  { %918 = vmatpush3.bf16.msra.mxu0 %v1056_v11 }
  0xe9   :  { %919 = vmatprep.subr.bf16.mxu0 %v1057_v12 }
  0xec   :  { %920 = vmatpush3.bf16.msra.mxu0 %v1058_v13 }
  0xed   :  { %921 = vmatprep.subr.bf16.mxu0 %v1059_v14 }
  0xf0   :  { %922 = vmatpush3.bf16.msra.mxu0 %v1060_v15 }
  0xf1   :  { %923 = vmatprep.subr.bf16.mxu0 %v1061_v29 }
  0xf4   :  { %924 = vmatpush3.bf16.msra.mxu0 %v1062_v30 }
  0xf5   :  { %925 = vmatprep.subr.bf16.mxu0 %v1063_v31 }
  0xf8   :  { %926 = vmatpush3.bf16.msra.mxu0 %v1064_v32 }
  0xf9   :  { %942 = vmatprep.subr.bf16.mxu0 %v1201_v33 }
 0x1ae   :  { %v270_v19 = vpop.f32.mrb[0].mxu0 }
 0x1af   :  { %v271_v20 = vadd.f32 %v270_v19, %v149_v17  ;;  %v272_v21 = vpop.f32.mrb[1].mxu0 }
 0x1b0   :  { %v273_v22 = vadd.f32 %v272_v21, %v153_v18  ;;  %v274_v23 = vpop.f32.mrb[2].mxu0 }
 0x1b1   :  { %v277_v24 = vmax.f32 %v271_v20, 0.0  ;;  %v275_v25 = vpop.f32.mrb[3].mxu0 }
 0x1b2   :  { %v278_v26 = vmax.f32 %v273_v22, 0.0 }
 0x1b3   :  { %v279_v28 = vpack.c.bf16 %v277_v24, %v277_v24 }
 0x1b4   :  { %v280_v27 = vpack.c.bf16 %v278_v26, %v278_v26 }
 0x1b6   :  { %517 = vmatprep.mubr.bf16.mxu1 %v280_v27 }
 0x1b7   :  { %518 = vmatmul.mubr.bf16.vlgmr.msra.gmra.mrb[0].mxu1 %v279_v28 }
 0x28a   :  { %v519_v37 = vpop.f32.mrb[0].mxu1 }
 0x28b   :  { %v520_v38 = vadd.f32 %v519_v37, %v318_v35  ;;  %v521_v39 = vpop.f32.mrb[1].mxu1 }
 0x28c   :  { %v522_v40 = vadd.f32 %v521_v39, %v322_v36  ;;  %v523_v41 = vpop.f32.mrb[2].mxu1 }
 0x28d   :  { %v526_v42 = vmax.f32 %v520_v38, 0.0  ;;  %v524_v43 = vpop.f32.mrb[3].mxu1 }
 0x28e   :  { %v527_v44 = vmax.f32 %v522_v40, 0.0 }
 0x28f   :  { %v528_v47 = vpack.c.bf16 %v526_v42, %v526_v42 }
 0x290   :  { %v529_v45 = vpack.c.bf16 %v527_v44, %v527_v44 }
 0x292   :  { %697 = vmatprep.mubr.bf16.mxu0 %v529_v45 }
 0x293   :  { %698 = vmatmul.mubr.bf16.vlgmr.msra.gmra.mrb[4].mxu0 %v528_v47 }
 0x294   :  { %943 = vmatpush3.bf16.msra.mxu0 %v1065_v46  ;;  %958 = vmatprep.mubr.msk.bf16.mxu0 %vm1202_vm0, %v1201_v33 }
 0x295   :  { %944 = vmatprep.subr.bf16.mxu0 %v1201_v33 }
 0x298   :  { %945 = vmatpush3.bf16.msra.mxu0 %v1066_v48 }
 0x299   :  { %946 = vmatprep.subr.bf16.mxu0 %v1201_v33 }
 0x29c   :  { %947 = vmatpush3.bf16.msra.mxu0 %v1067_v49 }
 0x29d   :  { %948 = vmatprep.subr.bf16.mxu0 %v1201_v33 }
 0x2a0   :  { %949 = vmatpush3.bf16.msra.mxu0 %v1068_v50 }
 0x2a1   :  { %950 = vmatprep.subr.bf16.mxu0 %v1201_v33 }
 0x2a4   :  { %951 = vmatpush3.bf16.msra.mxu0 %v1069_v51 }
 0x2a5   :  { %952 = vmatprep.subr.bf16.mxu0 %v1201_v33 }
 0x2a8   :  { %953 = vmatpush3.bf16.msra.mxu0 %v1070_v52 }
 0x2a9   :  { %954 = vmatprep.subr.bf16.mxu0 %v1201_v33 }
 0x2ac   :  { %955 = vmatpush3.bf16.msra.mxu0 %v1071_v53 }
 0x2ad   :  { %956 = vmatprep.subr.bf16.mxu0 %v1201_v33 }
 0x2b0   :  { %957 = vmatpush3.bf16.msra.mxu0 %v1072_v54 }
 0x366   :  { %v927_v55 = vpop.f32.mrb[4].mxu0 }
 0x367   :  { %v928_v57 = vpop.f32.mrb[5].mxu0 }
 0x368   :  { %v929_v58 = vadd.f32 %v928_v57, %v927_v55  ;;  %v930_v59 = vpop.f32.mrb[6].mxu0 }
 0x369   :  { %v931_v60 = vpop.f32.mrb[7].mxu0 }
 0x36a   :  { %v700_v61 = vadd.f32 %v929_v58, %v885_v56 }
 0x36c   :  { %v705_v62 = vmax.f32 %v700_v61, 0.0 }
 0x36e   :  { %v706_v63 = vpack.c.bf16 %v705_v62, %v705_v62 }
 0x370   :  { %959 = vmatmul.mubr.bf16.vlgmr.msra.gmra.mrb[8].mxu0 %v706_v63 }
 0x443   :  { %v812_v1 = vpop.f32.mrb[8].mxu0 }
 0x444   :  { %v813_v2 = vadd.f32 %v902_v0, %v812_v1  ;;  %v960_v3 = vpop.f32.mrb[9].mxu0 }
 0x445   :  { %v815_v4 = vpop.f32.mrb[10].mxu0 }
 0x446   :  { %818 = vst [vmem:[#allocation10] sm:$0xff] %v813_v2  ;;  %v961_v5 = vpop.f32.mrb[11].mxu0 }
 0x447   :  { %1172 = shalt.err (!%p1169_p8)
}
 0x448   :  { %s1173_s10 = scalar_lea.hbm %s1373_s11, 128 }
 0x449   :  { %p1174_p9 = scmp.ne.s32.totalorder %s1373_s11, %s1173_s10  ;;  %p1177_p10 = scmp.lt.u32.totalorder %s1173_s10, %s1373_s11 }
 0x44b   :  { %p1179_p11 = pnand %p1177_p10, %p1174_p9 }
 0x44d   :  { %1182 = shalt.err (!%p1179_p11)
}
 0x44e   :  { %828 = dma.vmem_to_hbm [thread:$0]  %s826_s30, 128, %s1373_s11, [#allocation4]  }
 0x44f   :  { %1189 = dma.done.wait [#allocation4], 128  }
 0x450   :  { %1190 = vsyncadd [#allocation4], 4294967168 }
 0x451   :  { %832 = vsyncpa [#allocation3], 1 }
 0x452   :  { %833 = vsyncpa [#allocation6], 1 }
 0x453   :  { %834 = vsyncpa [#allocation9], 1 }
 0x454   :  { %835 = vsyncpa [#allocation4], 1 }

</bundles_post_ra>
